<compile_context>
chip_gen: v5e
topology: v5e:2x2
jax: 0.10.0
libtpu: 0.0.40
codegen_flags: <defaults>
</compile_context>

<pallas_src>
import functools

import jax
import jax.numpy as jnp
from jax.experimental import pallas as pl
from jax.experimental.pallas import tpu as pltpu


# ---------------------------------------------------------------------------
# Pallas kernel: LayerNorm with torch semantics
#   y = a_2 * (x - mean) / (std_unbiased + eps) + b_2
# ---------------------------------------------------------------------------
def _layernorm_kernel(x_ref, a_ref, b_ref, o_ref, *, eps: float, d: int):
    # x_ref: (TM, D) rows; a_ref / b_ref: (1, D)
    x = x_ref[...].astype(jnp.float32)
    mean = jnp.mean(x, axis=-1, keepdims=True)
    xc = x - mean
    # torch.Tensor.std() default is unbiased (ddof = 1)
    var = jnp.sum(xc * xc, axis=-1, keepdims=True) * (1.0 / (d - 1))
    std = jnp.sqrt(var)
    inv = 1.0 / (std + eps)
    y = a_ref[...].astype(jnp.float32) * (xc * inv) + b_ref[...].astype(jnp.float32)
    o_ref[...] = y.astype(o_ref.dtype)


def _round_up(x: int, m: int) -> int:
    return ((x + m - 1) // m) * m


def layer_norm(x: jnp.ndarray, a_2: jnp.ndarray, b_2: jnp.ndarray,
               *, eps: float = 1e-6, row_tile: int = 512) -> jnp.ndarray:
    """LayerNorm over the last dim of x (any leading shape), Pallas on TPU."""
    orig_shape = x.shape
    D = orig_shape[-1]
    rows = 1
    for s in orig_shape[:-1]:
        rows *= s
    x2 = x.reshape(rows, D)

    if rows <= row_tile:
        # single block covering all rows (block dim == full array dim is legal)
        TM, R = rows, rows
    else:
        TM = row_tile                       # multiple of 8, VMEM-safe
        R = _round_up(rows, TM)
        if R != rows:
            x2 = jnp.pad(x2, ((0, R - rows), (0, 0)))

    a2 = a_2.reshape(1, D)
    b2 = b_2.reshape(1, D)

    kernel = functools.partial(_layernorm_kernel, eps=float(eps), d=int(D))
    out = pl.pallas_call(
        kernel,
        out_shape=jax.ShapeDtypeStruct((R, D), x.dtype),
        grid=(R // TM,),
        in_specs=[
            pl.BlockSpec((TM, D), lambda i: (i, 0)),
            pl.BlockSpec((1, D), lambda i: (0, 0)),
            pl.BlockSpec((1, D), lambda i: (0, 0)),
        ],
        out_specs=pl.BlockSpec((TM, D), lambda i: (i, 0)),
        compiler_params=pltpu.CompilerParams(
            dimension_semantics=("parallel",),   # lets v7x shard rows over 2 TCs
        ),
    )(x2, a2, b2)

    if R != rows:
        out = out[:rows]
    return out.reshape(orig_shape)


# ---------------------------------------------------------------------------
# Decoder wrapper (mirrors Decoder.forward / Decoder.splat)
# ---------------------------------------------------------------------------
def decoder_splat(X: jnp.ndarray, k: int) -> jnp.ndarray:
    """Y = X.unsqueeze(1).expand(B, k, S, D).reshape(-1, S, D)."""
    B, S, D = X.shape
    return jnp.broadcast_to(X[:, None, :, :], (B, k, S, D)).reshape(B * k, S, D)


def decoder_forward(x, memory, src_mask, tgt_mask, layers, norm_a, norm_b,
                    *, eps: float = 1e-6):
    """for layer in layers: x = layer(x, memory, src_mask, tgt_mask); return norm(x)."""
    # TODO(synk): the DecoderLayer (self-attn, src-attn, FFN) is an opaque
    # constructor argument not defined in this module spec; it is applied here
    # as a plain JAX callable rather than translated to Pallas.
    for layer_fn in layers:
        x = layer_fn(x, memory, src_mask, tgt_mask)
    return layer_norm(x, norm_a, norm_b, eps=eps)


# ---------------------------------------------------------------------------
# Main
# ---------------------------------------------------------------------------
if __name__ == "__main__":
    key = jax.random.PRNGKey(0)
    B, S_TGT, S_SRC, D = 2, 8, 8, 32
    N_LAYERS = 2
    EPS = 1e-6

    k1, k2, k3, k4 = jax.random.split(key, 4)
    x = jax.random.normal(k1, (B, S_TGT, D), dtype=jnp.float32)
    memory = jax.random.normal(k2, (B, S_SRC, D), dtype=jnp.float32)
    src_mask = jnp.ones((B, 1, S_SRC), dtype=jnp.float32)
    tgt_mask = jnp.tril(jnp.ones((S_TGT, S_TGT), dtype=jnp.float32))[None, :, :]

    # LayerNorm params (module init is ones/zeros; use non-trivial values to
    # actually exercise scale/bias in the check)
    a_2 = 1.0 + 0.1 * jax.random.normal(k3, (D,), dtype=jnp.float32)
    b_2 = 0.1 * jax.random.normal(k4, (D,), dtype=jnp.float32)

    # Opaque stand-ins for the N generic DecoderLayer modules (identity).
    layers = [(lambda y, m, sm, tm: y) for _ in range(N_LAYERS)]

    out = decoder_forward(x, memory, src_mask, tgt_mask, layers, a_2, b_2, eps=EPS)
    out = jax.block_until_ready(out)

    # Pure-JAX reference of the torch LayerNorm semantics (unbiased std,
    # eps added to std), applied after the (identity) layer stack.
    mean = x.mean(-1, keepdims=True)
    std = jnp.sqrt(((x - mean) ** 2).sum(-1, keepdims=True) / (D - 1))
    ref = a_2 * (x - mean) / (std + EPS) + b_2
    assert jnp.allclose(out, ref, atol=1e-5), "mismatch vs reference"

    # Also exercise the splat helper once (not part of forward, but in the spec).
    _ = jax.block_until_ready(decoder_splat(x, 3))

    print("KERNEL_OK")
</pallas_src>

<mosaic_0001>
module attributes {stable_mosaic.version = 11 : i64} {
  func.func @_layernorm_kernel(%arg0: i32, %arg1: memref<16x32xf32, #tpu.memory_space<vmem>>, %arg2: memref<1x32xf32, #tpu.memory_space<vmem>>, %arg3: memref<1x32xf32, #tpu.memory_space<vmem>>, %arg4: memref<16x32xf32, #tpu.memory_space<vmem>>) attributes {dimension_semantics = [#tpu.dimension_semantics<parallel>], iteration_bounds = array<i64: 1>, scalar_prefetch = 0 : i64, scratch_operands = 0 : i64, tpu.core_type = #tpu.core_type<tc>, window_params = [{transform_indices = @transform_0, window_bounds = array<i64: 16, 32>}, {pipeline_mode = #tpu.pipeline_mode<synchronous>, transform_indices = @transform_1, window_bounds = array<i64: 1, 32>}, {pipeline_mode = #tpu.pipeline_mode<synchronous>, transform_indices = @transform_2, window_bounds = array<i64: 1, 32>}, {transform_indices = @transform_3, window_bounds = array<i64: 16, 32>}]} {
    %c0 = arith.constant 0 : index
    %c0_0 = arith.constant 0 : index
    %0 = vector.load %arg1[%c0, %c0_0] : memref<16x32xf32, #tpu.memory_space<vmem>>, vector<16x32xf32>
    %cst = arith.constant dense<0.000000e+00> : vector<16xf32>
    %1 = vector.multi_reduction <add>, %0, %cst [1] : vector<16x32xf32> to vector<16xf32>
    %2 = vector.shape_cast %1 : vector<16xf32> to vector<16x1xf32>
    %cst_1 = arith.constant 3.200000e+01 : f32
    %3 = vector.broadcast %cst_1 : f32 to vector<16x1xf32>
    %4 = arith.divf %2, %3 : vector<16x1xf32>
    %5 = vector.broadcast %4 : vector<16x1xf32> to vector<16x32xf32>
    %6 = arith.subf %0, %5 : vector<16x32xf32>
    %7 = arith.mulf %6, %6 : vector<16x32xf32>
    %cst_2 = arith.constant dense<0.000000e+00> : vector<16xf32>
    %8 = vector.multi_reduction <add>, %7, %cst_2 [1] : vector<16x32xf32> to vector<16xf32>
    %9 = vector.shape_cast %8 : vector<16xf32> to vector<16x1xf32>
    %cst_3 = arith.constant 0.0322580636 : f32
    %10 = vector.broadcast %cst_3 : f32 to vector<16x1xf32>
    %11 = arith.mulf %9, %10 : vector<16x1xf32>
    %12 = math.sqrt %11 : vector<16x1xf32>
    %cst_4 = arith.constant 9.99999997E-7 : f32
    %13 = vector.broadcast %cst_4 : f32 to vector<16x1xf32>
    %14 = arith.addf %12, %13 : vector<16x1xf32>
    %cst_5 = arith.constant 1.000000e+00 : f32
    %15 = vector.broadcast %cst_5 : f32 to vector<16x1xf32>
    %16 = arith.divf %15, %14 : vector<16x1xf32>
    %c0_6 = arith.constant 0 : index
    %c0_7 = arith.constant 0 : index
    %17 = vector.load %arg2[%c0_6, %c0_7] : memref<1x32xf32, #tpu.memory_space<vmem>>, vector<1x32xf32>
    %18 = vector.broadcast %16 : vector<16x1xf32> to vector<16x32xf32>
    %19 = arith.mulf %6, %18 : vector<16x32xf32>
    %20 = vector.broadcast %17 : vector<1x32xf32> to vector<16x32xf32>
    %21 = arith.mulf %20, %19 : vector<16x32xf32>
    %c0_8 = arith.constant 0 : index
    %c0_9 = arith.constant 0 : index
    %22 = vector.load %arg3[%c0_8, %c0_9] : memref<1x32xf32, #tpu.memory_space<vmem>>, vector<1x32xf32>
    %23 = vector.broadcast %22 : vector<1x32xf32> to vector<16x32xf32>
    %24 = arith.addf %21, %23 : vector<16x32xf32>
    %c0_10 = arith.constant 0 : index
    %c0_11 = arith.constant 0 : index
    %25 = vector.load %arg4[%c0_10, %c0_11] : memref<16x32xf32, #tpu.memory_space<vmem>>, vector<16x32xf32>
    tpu.vector_store %arg4[%c0_10, %c0_11], %24 {strides = array<i32>} : memref<16x32xf32, #tpu.memory_space<vmem>>, vector<16x32xf32>,
    return
  }
  func.func @transform_0(%arg0: i32) -> (i32, i32) {
    %c0_i32 = arith.constant 0 : i32
    %c0_i32_0 = arith.constant 0 : i32
    return %arg0, %c0_i32 : i32, i32
  }
  func.func @transform_1(%arg0: i32) -> (i32, i32) {
    %c0_i32 = arith.constant 0 : i32
    %c0_i32_0 = arith.constant 0 : i32
    %c0_i32_1 = arith.constant 0 : i32
    return %c0_i32, %c0_i32_0 : i32, i32
  }
  func.func @transform_2(%arg0: i32) -> (i32, i32) {
    %c0_i32 = arith.constant 0 : i32
    %c0_i32_0 = arith.constant 0 : i32
    %c0_i32_1 = arith.constant 0 : i32
    return %c0_i32, %c0_i32_0 : i32, i32
  }
  func.func @transform_3(%arg0: i32) -> (i32, i32) {
    %c0_i32 = arith.constant 0 : i32
    %c0_i32_0 = arith.constant 0 : i32
    return %arg0, %c0_i32 : i32, i32
  }
}

</mosaic_0001>

<bundles_post_ra>
// kernel: tpu_custom_call.1
= control target key start
LH: loop header
LB: loop body
LE: loop exit
PB: predicated region body
PF: predicated region fallthrough
CT: control target
= control target key end

     0   :  { %8 = vsyncpa [#allocation3], 0  ;;  %s318_s0 = inlined_call_operand.hbm [shape: f32[16,32], index: 0, kind: input, shape index: {}]   ;;  %s319_s1 = inlined_call_operand.hbm [shape: f32[1,32], index: 1, kind: input, shape index: {}]   ;;  %s320_s2 = inlined_call_operand.vmem [shape: f32[1,32], index: 2, kind: input, shape index: {}]   ;;  %s321_s3 = inlined_call_operand.hbm [shape: f32[16,32], index: 3, kind: output, shape index: {}]  }
   0x1   :  { %9 = vsyncpa [#allocation6], 0 }
   0x2   :  { %10 = vsyncpa [#allocation4], 0  ;;  %s15_s14 = sshll.u32 %s318_s0, 4  ;;  %s263_s15 = smov [#allocation2]   ;;  %s16_s14 = int_to_ptr.hbm [resolvable:$true] %s15_s14 }
   0x3   :  { %s17_s16 = sshll.u32 %s263_s15, 4  ;;  %s29_s19 = sshll.u32 %s319_s1, 4  ;;  %s18_s16 = int_to_ptr.vmem [resolvable:$true] %s17_s16  ;;  %s30_s19 = int_to_ptr.hbm [resolvable:$true] %s29_s19 }
   0x4   :  { %s264_s20 = smov 128   ;;  %s265_s21 = smov 8  }
   0x5   :  { %23 = dma.hbm_to_vmem [thread:$0]  %s16_s14, 256, %s18_s16, [#allocation3], %s264_s20, %s264_s20, %s265_s21  }
   0x6   :  { %s266_s22 = smov [#allocation5]  }
   0x7   :  { %s31_s23 = sshll.u32 %s266_s22, 4  ;;  %s32_s23 = int_to_ptr.vmem [resolvable:$true] %s31_s23 }
   0x8   :  { %34 = dma.hbm_to_vmem [thread:$0]  %s30_s19, 16, %s32_s23, [#allocation6]  }
   0x9   :  { %257 = dma.done.wait [#allocation3], 256  }
   0xa   :  { %258 = vsyncadd [#allocation3], 4294967040 }
   0xb   :  { %259 = dma.done.wait [#allocation6], 16  }
   0xc   :  { %260 = vsyncadd [#allocation6], 4294967280  ;;  %vm47_vm0 = vcmask 261120   ;;  %v45_v0 = vld [vmem:[#allocation2] sm:$0xff]  ;;  %v46_v2 = vld [vmem:[#allocation2 + $0x8] sm:$0xff]  ;;  %v267_v4 = vmov 32.0  }
   0xd   :  { %v48_v1 = vsel %vm47_vm0, %v45_v0, 0.0  ;;  %v51_v3 = vsel %vm47_vm0, %v46_v2, 0.0  ;;  %175 = vrcp.f32 %v267_v4  ;;  %v173_v58 = vld [vmem:[#allocation5] ss:$0 sm:$0xff]  ;;  %v174_v62 = vld [vmem:[%s320_s2] ss:$0 sm:$0xff] }
   0xe   :  { %49 = vadd.xlane.f32.xlu0 %v48_v1  ;;  %s268_s24 = smov [#allocation7]   ;;  %s153_s27 = sshll.u32 %s321_s3, 4  ;;  %s154_s27 = int_to_ptr.hbm [resolvable:$true] %s153_s27 }
   0xf   :  { %s151_s25 = sshll.u32 %s268_s24, 4  ;;  %s152_s25 = int_to_ptr.vmem [resolvable:$true] %s151_s25 }
  0x13   :  { %v176_v5 = vpop.eup %175 }
  0x14   :  { %v55_v6 = vmul.f32 32.0, %v176_v5  ;;  %vm59_vm1 = vweird.f32 %v176_v5 }
  0x16   :  { %52 = vadd.xlane.f32.xlu0 %v51_v3  ;;  %v56_v7 = vsub.f32 1.0, %v55_v6 }
  0x18   :  { %v57_v8 = vmul.f32 %v176_v5, %v56_v7 }
  0x1a   :  { %v58_v9 = vadd.f32 %v176_v5, %v57_v8 }
  0x1c   :  { %v60_v10 = vsel %vm59_vm1, %v176_v5, %v58_v9 }
  0x81   :  { %v50_v11 = vpop.xlane.xlu0 %49 }
  0x82   :  { %v61_v12 = vmul.f32 %v60_v10, %v50_v11 }
  0x84   :  { %v63_v13 = vsub.f32 %v45_v0, %v61_v12 }
  0x86   :  { %v65_v14 = vmul.f32 %v63_v13, %v63_v13 }
  0x88   :  { %v67_v15 = vsel %vm47_vm0, %v65_v14, 0.0 }
  0x89   :  { %68 = vadd.xlane.f32.xlu1 %v67_v15  ;;  %v53_v16 = vpop.xlane.xlu0 %52 }
  0x8a   :  { %v62_v17 = vmul.f32 %v60_v10, %v53_v16 }
  0x8c   :  { %v301_v18 = vsub.f32 %v46_v2, %v62_v17 }
  0x8e   :  { %v66_v19 = vmul.f32 %v301_v18, %v301_v18 }
  0x90   :  { %v70_v20 = vsel %vm47_vm0, %v66_v19, 0.0 }
  0x91   :  { %71 = vadd.xlane.f32.xlu1 %v70_v20 }
  0xfc   :  { %v69_v21 = vpop.xlane.xlu1 %68 }
  0xfd   :  { %v73_v22 = vmul.f32 0.032258064, %v69_v21 }
  0xff   :  { %177 = vrsqrt.f32 %v73_v22  ;;  %vm82_vm2 = vcmp.eq.f32.partialorder %v73_v22, inf  ;;  %v85_v35 = vand.u32 2147483648, %v73_v22  ;;  %vm84_vm3 = vcmp.eq.f32.partialorder %v73_v22, 0.0 }
 0x104   :  { %v72_v23 = vpop.xlane.xlu1 %71 }
 0x105   :  { %v178_v24 = vpop.eup %177  ;;  %v74_v25 = vmul.f32 0.032258064, %v72_v23 }
 0x106   :  { %v76_v26 = vmul.f32 %v178_v24, %v73_v22 }
 0x107   :  { %179 = vrsqrt.f32 %v74_v25  ;;  %vm94_vm4 = vcmp.eq.f32.partialorder %v74_v25, inf  ;;  %v97_v43 = vand.u32 2147483648, %v74_v25  ;;  %vm96_vm5 = vcmp.eq.f32.partialorder %v74_v25, 0.0 }
 0x108   :  { %v77_v27 = vmul.f32 %v178_v24, %v76_v26 }
 0x10a   :  { %v78_v28 = vmul.f32 0.5, %v77_v27 }
 0x10c   :  { %v79_v29 = vsub.f32 1.5, %v78_v28 }
 0x10d   :  { %v180_v30 = vpop.eup %179 }
 0x10e   :  { %v80_v31 = vmul.f32 %v178_v24, %v79_v29  ;;  %v88_v32 = vmul.f32 %v180_v30, %v74_v25 }
 0x110   :  { %v81_v33 = vmul.f32 %v80_v31, %v73_v22  ;;  %v89_v34 = vmul.f32 %v180_v30, %v88_v32 }
 0x112   :  { %v83_v36 = vsel %vm82_vm2, %v73_v22, %v81_v33  ;;  %v90_v37 = vmul.f32 0.5, %v89_v34 }
 0x113   :  { %v86_v38 = vsel %vm84_vm3, %v85_v35, %v83_v36 }
 0x114   :  { %v99_v39 = vadd.f32 1e-06, %v86_v38  ;;  %v91_v40 = vsub.f32 1.5, %v90_v37 }
 0x116   :  { %181 = vrcp.f32 %v99_v39  ;;  %v92_v41 = vmul.f32 %v180_v30, %v91_v40  ;;  %v112_v50 = vand.u32 2147483648, %v99_v39  ;;  %v110_v52 = vand.u32 2147483647, %v99_v39 }
 0x117   :  { %vm106_vm7 = vweird.f32 %v99_v39 }
 0x118   :  { %v93_v42 = vmul.f32 %v92_v41, %v74_v25  ;;  %v113_v55 = vor.u32 1.1754944e-38, %v112_v50  ;;  %vm111_vm9 = vcmp.eq.f32.partialorder %v110_v52, 8.507059e+37 }
 0x11a   :  { %v95_v44 = vsel %vm94_vm4, %v74_v25, %v93_v42 }
 0x11b   :  { %v98_v45 = vsel %vm96_vm5, %v97_v43, %v95_v44 }
 0x11c   :  { %v182_v46 = vpop.eup %181  ;;  %v100_v47 = vadd.f32 1e-06, %v98_v45 }
 0x11d   :  { %v102_v48 = vmul.f32 %v182_v46, %v99_v39  ;;  %vm107_vm6 = vweird.f32 %v182_v46 }
 0x11e   :  { %183 = vrcp.f32 %v100_v47  ;;  %vm108_vm8 = vmor %vm106_vm7, %vm107_vm6  ;;  %v127_v63 = vand.u32 2147483648, %v100_v47  ;;  %v125_v1 = vand.u32 2147483647, %v100_v47  ;;  %vm121_vm11 = vweird.f32 %v100_v47 }
 0x11f   :  { %v103_v49 = vsub.f32 1.0, %v102_v48 }
 0x120   :  { %v128_v5 = vor.u32 1.1754944e-38, %v127_v63  ;;  %vm126_vm13 = vcmp.eq.f32.partialorder %v125_v1, 8.507059e+37 }
 0x121   :  { %v104_v51 = vmul.f32 %v182_v46, %v103_v49 }
 0x123   :  { %v105_v53 = vadd.f32 %v182_v46, %v104_v51 }
 0x124   :  { %v184_v54 = vpop.eup %183 }
 0x125   :  { %v109_v56 = vsel %vm108_vm8, %v182_v46, %v105_v53  ;;  %v117_v57 = vmul.f32 %v184_v54, %v100_v47  ;;  %vm122_vm10 = vweird.f32 %v184_v54 }
 0x126   :  { %v114_v59 = vsel %vm111_vm9, %v113_v55, %v109_v56  ;;  %vm123_vm12 = vmor %vm121_vm11, %vm122_vm10 }
 0x127   :  { %v118_v60 = vsub.f32 1.0, %v117_v57  ;;  %v132_v61 = vmul.f32 %v114_v59, %v63_v13 }
 0x129   :  { %v119_v0 = vmul.f32 %v184_v54, %v118_v60  ;;  %v137_v2 = vmul.f32 %v173_v58, %v132_v61 }
 0x12b   :  { %v120_v3 = vadd.f32 %v184_v54, %v119_v0  ;;  %v143_v4 = vadd.f32 %v174_v62, %v137_v2 }
 0x12d   :  { %v124_v6 = vsel %vm123_vm12, %v184_v54, %v120_v3  ;;  %145 = vst.msk [vmem:[#allocation7] sm:$0xff] %vm47_vm0, %v143_v4 }
 0x12e   :  { %v129_v7 = vsel %vm126_vm13, %v128_v5, %v124_v6 }
 0x12f   :  { %v133_v8 = vmul.f32 %v129_v7, %v301_v18 }
 0x131   :  { %v138_v9 = vmul.f32 %v173_v58, %v133_v8 }
 0x133   :  { %v144_v10 = vadd.f32 %v174_v62, %v138_v9 }
 0x135   :  { %146 = vst.msk [vmem:[#allocation7 + $0x8] sm:$0xff] %vm47_vm0, %v144_v10 }
 0x136   :  { %159 = dma.vmem_to_hbm [thread:$0]  %s152_s25, 256, %s154_s27, [#allocation4], %s264_s20, %s264_s20, %s265_s21  }
 0x137   :  { %261 = dma.done.wait [#allocation4], 256  }
 0x138   :  { %262 = vsyncadd [#allocation4], 4294967040 }
 0x139   :  { %164 = vsyncpa [#allocation3], 1 }
 0x13a   :  { %165 = vsyncpa [#allocation6], 1 }
 0x13b   :  { %166 = vsyncpa [#allocation4], 1 }

</bundles_post_ra>
